<compile_context>
chip_gen: v6e
topology: v6e:2x2x1
jax: 0.10.0
libtpu: 0.0.40
codegen_flags: <defaults>
</compile_context>

<pallas_src>
import jax
import jax.numpy as jnp
from jax.experimental import pallas as pl
from jax.experimental.pallas import tpu as pltpu

_LANES = 128
# Below this many elements, pallas_call's fixed launch/DMA-setup overhead
# dominates; a fused XLA elementwise op is strictly faster.
_TINY_FASTPATH_ELEMS = 64 * 1024


def _sigmoid_kernel(x_ref, o_ref):
    # Elementwise sigmoid on the whole tile; logistic lowers to the EUP path,
    # keeping the VALU slot free (kernel is memory-bound anyway).
    o_ref[...] = jax.nn.sigmoid(x_ref[...]).astype(o_ref.dtype)


def _round_up(x, m):
    return ((x + m - 1) // m) * m


def _cdiv(a, b):
    return -(-a // b)


def yn_forward(x, *, min_pallas_elements=_TINY_FASTPATH_ELEMS):
    """Forward of YN: elementwise sigmoid over an NCHW tensor (Pallas TPU)."""
    orig_shape = x.shape
    orig_dtype = x.dtype

    total = 1
    for d in orig_shape:
        total *= d

    # Tiny-input fast path.
    if total < max(int(min_pallas_elements), 1):
        return jax.nn.sigmoid(x).astype(orig_dtype)

    itemsize = jnp.dtype(orig_dtype).itemsize
    # dtype-native sublane packing: f32 -> 8, bf16/f16 -> 16, int8/fp8 -> 32.
    sublane = max(8, 32 // itemsize)

    # ~2 MiB per pipeline buffer: 2 x (in + out) double buffers = ~8 MiB of
    # BlockSpec buffering -> safe under every generation's default scoped-VMEM
    # limit (v5e 16 MiB, v6e/v7x 32 MiB) with no roofline loss.
    max_tile_rows = max(
        sublane, _round_up((2 * 1024 * 1024) // (_LANES * itemsize), sublane)
    )

    rows = _cdiv(total, _LANES)  # lane-dense row count

    # Balance the tile across the grid; force >= 2 grid steps when possible so
    # the "parallel" axis shards across both v7x TensorCores.
    num_tiles = _cdiv(rows, max_tile_rows)
    if num_tiles < 2 and rows >= 2 * sublane:
        num_tiles = 2
    tile_rows = max(sublane, _round_up(_cdiv(rows, num_tiles), sublane))
    grid = (_cdiv(rows, tile_rows),)  # last block may be partial (masked)

    padded_total = rows * _LANES
    x_flat = jnp.ravel(x)
    needs_pad = padded_total != total
    if needs_pad:
        # Ragged tail only (< 128 elements); allow_input_fusion below lets XLA
        # fuse this pad into the kernel's input DMA instead of a full HBM pass.
        x_flat = jnp.pad(x_flat, (0, padded_total - total))
    x2d = x_flat.reshape(rows, _LANES)

    cost = pl.CostEstimate(
        flops=4 * padded_total,
        transcendentals=padded_total,
        bytes_accessed=2 * padded_total * itemsize,
    )

    out2d = pl.pallas_call(
        _sigmoid_kernel,
        out_shape=jax.ShapeDtypeStruct((rows, _LANES), orig_dtype),
        grid_spec=pl.GridSpec(
            grid=grid,
            in_specs=[pl.BlockSpec((tile_rows, _LANES), lambda i: (i, 0))],
            out_specs=pl.BlockSpec((tile_rows, _LANES), lambda i: (i, 0)),
        ),
        compiler_params=pltpu.CompilerParams(
            dimension_semantics=("parallel",),
            allow_input_fusion=[True] if needs_pad else None,
        ),
        cost_estimate=cost,
    )(x2d)

    if needs_pad:
        return out2d.reshape(-1)[:total].reshape(orig_shape)
    return out2d.reshape(orig_shape)


if __name__ == "__main__":
    k1, k2 = jax.random.split(jax.random.PRNGKey(0))

    # Small NCHW input matching the module: batch=2, channels=4, spatial=16x16.
    x_small = jax.random.normal(k1, (2, 4, 16, 16), dtype=jnp.float32)
    # Medium input that takes the Pallas path by default (2*16*64*64 = 131072).
    x_big = jax.random.normal(k2, (2, 16, 64, 64), dtype=jnp.float32)

    # 1) Default path on the small input (tiny-input fused fast path).
    y_small = jax.block_until_ready(yn_forward(x_small))
    # 2) Force the Pallas kernel on the same small input to exercise it.
    y_small_pl = jax.block_until_ready(yn_forward(x_small, min_pallas_elements=1))
    # 3) Pallas path on the medium input.
    y_big = jax.block_until_ready(yn_forward(x_big))

    ref_small = jax.nn.sigmoid(x_small)
    ref_big = jax.nn.sigmoid(x_big)

    assert y_small.shape == x_small.shape and y_small.dtype == x_small.dtype
    assert y_small_pl.shape == x_small.shape and y_small_pl.dtype == x_small.dtype
    assert y_big.shape == x_big.shape and y_big.dtype == x_big.dtype
    assert jnp.allclose(y_small, ref_small, atol=1e-6, rtol=1e-6)
    assert jnp.allclose(y_small_pl, ref_small, atol=1e-6, rtol=1e-6)
    assert jnp.allclose(y_big, ref_big, atol=1e-6, rtol=1e-6)

    print("KERNEL_OK")
</pallas_src>

<mosaic_0001>
module attributes {stable_mosaic.version = 11 : i64} {
  func.func @_sigmoid_kernel(%arg0: i32, %arg1: memref<8x128xf32, #tpu.memory_space<vmem>>, %arg2: memref<8x128xf32, #tpu.memory_space<vmem>>) attributes {dimension_semantics = [#tpu.dimension_semantics<parallel>], iteration_bounds = array<i64: 2>, scalar_prefetch = 0 : i64, scratch_operands = 0 : i64, tpu.core_type = #tpu.core_type<tc>, window_params = [{transform_indices = @transform_0, window_bounds = array<i64: 8, 128>}, {transform_indices = @transform_1, window_bounds = array<i64: 8, 128>}]} {
    %c0 = arith.constant 0 : index
    %c0_0 = arith.constant 0 : index
    %0 = vector.load %arg1[%c0, %c0_0] : memref<8x128xf32, #tpu.memory_space<vmem>>, vector<8x128xf32>
    %1 = arith.negf %0 : vector<8x128xf32>
    %2 = math.exp %1 : vector<8x128xf32>
    %cst = arith.constant 1.000000e+00 : f32
    %3 = vector.broadcast %cst : f32 to vector<8x128xf32>
    %4 = arith.addf %3, %2 : vector<8x128xf32>
    %5 = arith.divf %3, %4 : vector<8x128xf32>
    %c0_1 = arith.constant 0 : index
    %c0_2 = arith.constant 0 : index
    %6 = vector.load %arg2[%c0_1, %c0_2] : memref<8x128xf32, #tpu.memory_space<vmem>>, vector<8x128xf32>
    tpu.vector_store %arg2[%c0_1, %c0_2], %5 {strides = array<i32>} : memref<8x128xf32, #tpu.memory_space<vmem>>, vector<8x128xf32>,
    return
  }
  func.func @transform_0(%arg0: i32) -> (i32, i32) {
    %c0_i32 = arith.constant 0 : i32
    %c0_i32_0 = arith.constant 0 : i32
    return %arg0, %c0_i32 : i32, i32
  }
  func.func @transform_1(%arg0: i32) -> (i32, i32) {
    %c0_i32 = arith.constant 0 : i32
    %c0_i32_0 = arith.constant 0 : i32
    return %arg0, %c0_i32 : i32, i32
  }
}

</mosaic_0001>

<bundles_post_ra>
// kernel: tpu_custom_call.1
= control target key start
LH: loop header
LB: loop body
LE: loop exit
PB: predicated region body
PF: predicated region fallthrough
CT: control target
= control target key end

     0   :  { %6 = vsyncpa [#allocation3], 0  ;;  %s540_s0 = inlined_call_operand.hbm [shape: f32[16,128], index: 0, kind: input, shape index: {}]   ;;  %s541_s1 = inlined_call_operand.hbm [shape: f32[16,128], index: 1, kind: output, shape index: {}]  }
   0x1   :  { %8 = vsyncpa [#allocation3 + $0x1], 0 }
   0x2   :  { %9 = vsyncpa [#allocation4], 0 }
   0x3   :  { %11 = vsyncpa [#allocation4 + $0x1], 0  ;;  %s393_s6 = smov 0   ;;  %s395_s7 = smov 0  }
   0x4   :  { %s397_s8 = smov 0   ;;  %s399_s9 = smov 0  }
   0x5 LB: > { %s414_s10 = sadd.s32 4294967295, %s379_s9   ;;  %s224_s11 = sadd.s32 4294967294, %s379_s9   ;;  %s379_s9 = sphi %s399_s9, %s558_s9   ;;  %s375_s8 = sphi %s397_s8, %s557_s8   ;;  %s371_s7 = sphi %s395_s7, %s556_s7   ;;  %s367_s6 = sphi %s393_s6, %s555_s6  }
   0x6   : > { %s418_s12 = sadd.s32 1, %s379_s9   ;;  %s24_s13 = sadd.s32 1, %s375_s8 }
   0x7   : > { %s21_s14 = ssub.s32 %s379_s9, %s418_s12  ;;  %p31_p0 = scmp.ne.s32.totalorder %s375_s8, %s371_s7 }
   0x8   : > { %p22_p1 = scmp.eq.s32.totalorder %s21_s14, 0  ;;  %p32_p2 = scmp.eq.s32.totalorder %s379_s9, 0 }
   0x9   : > { %p37_p3 = scmp.ne.s32.totalorder %s371_s7, %s367_s6  ;;  %p38_p4 = scmp.eq.s32.totalorder %s414_s10, 0 }
   0xa   : > { %s430_s15 = scalar_select %p22_p1, %s375_s8, %s24_s13  }
   0xb   : > { %p432_p5 = por %p32_p2, %p31_p0  ;;  %p436_p6 = por %p38_p4, %p37_p3 }
   0xc   : > { %p61_p7 = scmp.eq.s32.totalorder %s414_s10, 1  ;;  %p67_p8 = scmp.eq.s32.totalorder %s224_s11, 1 }
   0xd   : > { %s545_s17 = scalar_select %p436_p6, 1, 0 }
   0xe   : > { %p249_p10 = scmp.lt.s32.totalorder %s379_s9, 2  ;;  %p443_p11 = por %p61_p7, %p31_p0 }
   0xf   : > { %p447_p12 = por %p67_p8, %p37_p3  ;;  %s87_s20 = sand.u32 1, %s375_s8  }
  0x10   : > { %s546_s18 = scalar_select %p443_p11, 1, 0 }
  0x11   : > { %s547_s19 = scalar_select %p447_p12, 1, 0 }
  0x12   : > { %s228_s21 = sshll.u32 %s379_s9, 7  ;;  %s227_s22 = sshll.u32 %s87_s20, 3 }
  0x13   : > { %s456_s25 = scalar_lea.hbm %s540_s0, %s228_s21  ;;  %s91_s26 = scalar_lea.vmem [#allocation2], %s227_s22 }
  0x14   : > { %s98_s27 = sshll.u32 %s91_s26, 4  ;;  %p460_p13 = pnand %p249_p10, %p432_p5  ;;  %s464_s27 = int_to_ptr.vmem [resolvable:$true] %s98_s27 }
  0x15   : > { %s88_s29 = scalar_lea.sflag [#allocation3], %s87_s20  ;;  %s287_s30 = scalar_lea.hbm %s456_s25, 128 }
  0x16   : > { %p288_p2 = scmp.ne.s32.totalorder %s456_s25, %s287_s30  ;;  %p289_p3 = pneg %p460_p13 }
  0x17   : > { %s292_s4 = scalar_lea.hbm %s540_s0, 256  ;;  %p293_p5 = scmp.lt.s32.totalorder %s456_s25, %s540_s0 }
  0x18   : > { %p290_p4 = pnand %p289_p3, %p288_p2  ;;  %p294_p8 = scmp.lt.s32.totalorder %s292_s4, %s287_s30 }
  0x1a   : > { %p291_p7 = pneg %p290_p4  ;;  %p295_p10 = por %p294_p8, %p293_p5 }
  0x1c   : > { %p296_p9 = pnand %p295_p10, %p291_p7 }
  0x1e   : > { %299 = shalt.err (!%p296_p9)
}
  0x1f   : > { %s300_s13 = scalar_lea.vmem %s464_s27, 128  ;;  %s381_s14 = smov [#allocation2]  }
  0x20   : > { %p301_p0 = scmp.ne.s32.totalorder %s464_s27, %s300_s13  ;;  %s305_s16 = sshll.u32 %s381_s14, 4  ;;  %s306_s16 = int_to_ptr.vmem [resolvable:$false] %s305_s16 }
  0x21   : > { %s307_s20 = scalar_lea.vmem %s306_s16, 256  ;;  %p308_p4 = scmp.lt.s32.totalorder %s464_s27, %s306_s16 }
  0x22   : > { %p303_p1 = pnand %p301_p0, %p289_p3  ;;  %p309_p12 = scmp.lt.s32.totalorder %s307_s20, %s300_s13 }
  0x24   : > { %p304_p2 = pneg %p303_p1  ;;  %p310_p11 = por %p309_p12, %p308_p4 }
  0x26   : > { %p311_p6 = pnand %p310_p11, %p304_p2 }
  0x28   : > { %314 = shalt.err (!%p311_p6)
}
  0x29   : > { %244 = dma.hbm_to_vmem [thread:$0]  (!%p460_p13), %s456_s25, 128, %s464_s27, %s88_s29  }
  0x2a   : > { %p549_p9 = scmp.lt.s32.totalorder %s379_s9, 3  ;;  %p550_p7 = scmp.ge.s32.totalorder %s379_s9, 1 }
  0x2c   : > { %p104_p0 = pnand %p550_p7, %p549_p9 }
  0x2d   : > { %s491_s21 = sand.u32 (!%p104_p0), 1, %s371_s7   ;;  %p551_p6 = scmp.ne.s32.totalorder (!%p104_p0), %s545_s17, 0 }
  0x2e   : > { %107 = sbr.rel (%p104_p0) target bundleno = 98 (0x62), region = 24  ;;  %s230_s22 = sshll.u32 (!%p104_p0), %s491_s21, 3 }
  0x2f   : > { %s110_s23 = scalar_lea.sflag (!%p104_p0), [#allocation3], %s491_s21  ;;  %s113_s24 = scalar_lea.vmem (!%p104_p0), [#allocation2], %s230_s22 }
  0x33   : > { %358 = dma.done.wait (%p551_p6), %s110_s23, 128  }
  0x34   : > { %360 = vsyncadd (%p551_p6), %s110_s23, 4294967168  ;;  %v132_v0 = vld [vmem:[%s113_s24] sm:$0xff]  ;;  %s131_s25 = scalar_lea.vmem [#allocation5], %s230_s22  ;;  %s234_s27 = sshll.u32 %s414_s10, 7 }
  0x35   : > { %v232_v1 = vmul.f32 -1.442695, %v132_v0  ;;  %s154_s26 = sshll.u32 %s131_s25, 4  ;;  %s152_s17 = scalar_lea.hbm %s541_s1, %s234_s27  ;;  %s500_s26 = int_to_ptr.vmem [resolvable:$true] %s154_s26 }
  0x36   : > { %s141_s30 = scalar_lea.sflag [#allocation4], %s491_s21  ;;  %s315_s2 = scalar_lea.vmem %s500_s26, 128 }
  0x37   : > { %283 = vpow2.f32 %v232_v1  ;;  %p316_p11 = scmp.ne.s32.totalorder %s500_s26, %s315_s2  ;;  %p552_p12 = scmp.ne.s32.totalorder %s546_s18, 0 }
  0x38   : > { %s382_s3 = smov [#allocation5]  }
  0x39   : > { %p317_p13 = pnand %p316_p11, %p552_p12  ;;  %s319_s4 = sshll.u32 %s382_s3, 4  ;;  %s320_s4 = int_to_ptr.vmem [resolvable:$false] %s319_s4 }
  0x3a   : > { %s321_s10 = scalar_lea.vmem %s320_s4, 256  ;;  %p322_p3 = scmp.lt.s32.totalorder %s500_s26, %s320_s4 }
  0x3b   : > { %p318_p1 = pneg %p317_p13  ;;  %p323_p5 = scmp.lt.s32.totalorder %s321_s10, %s315_s2 }
  0x3d   : > { %p324_p8 = por %p323_p5, %p322_p3 }
  0x3f   : > { %p325_p10 = pnand %p324_p8, %p318_p1 }
  0x44   : > { %v284_v2 = vpop.eup %283 }
  0x45   : > { %v136_v3 = vadd.f32 1.0, %v284_v2 }
  0x47   : > { %285 = vrcp.f32 %v136_v3 }
  0x54   : > { %v286_v4 = vpop.eup %285 }
  0x55   : > { %139 = vst [vmem:[%s131_s25] sm:$0xff] %v286_v4 }
  0x56   : > { %328 = shalt.err (!%p325_p10)
}
  0x57   : > { %s329_s5 = scalar_lea.hbm %s152_s17, 128  ;;  %s333_s14 = scalar_lea.hbm %s541_s1, 256 }
  0x58   : > { %p330_p2 = scmp.ne.s32.totalorder %s152_s17, %s329_s5  ;;  %p334_p7 = scmp.lt.s32.totalorder %s152_s17, %s541_s1 }
  0x59   : > { %p335_p0 = scmp.lt.s32.totalorder %s333_s14, %s329_s5 }
  0x5a   : > { %p331_p4 = pnand %p330_p2, %p552_p12 }
  0x5b   : > { %p336_p6 = por %p335_p0, %p334_p7 }
  0x5c   : > { %p332_p9 = pneg %p331_p4 }
  0x5e   : > { %p337_p11 = pnand %p336_p6, %p332_p9 }
  0x60   : > { %340 = shalt.err (!%p337_p11)
}
  0x61   : > { %239 = dma.vmem_to_hbm [thread:$0]  (%p552_p12), %s500_s26, 128, %s152_s17, %s141_s30  }
  0x62 PF: > { %s166_s21 = sand.u32 1, %s367_s6   ;;  %p553_p13 = scmp.ne.s32.totalorder %s547_s19, 0 }
  0x63   : > { %p554_p1 = scmp.ge.s32.totalorder %s379_s9, 2  ;;  %s167_s22 = scalar_lea.sflag [#allocation4], %s166_s21 }
  0x65   : > { %p246_p3 = pnand %p554_p1, %p553_p13 }
  0x67   : > { %p247_p5 = pneg %p246_p3 }
  0x69   : > { %362 = dma.done.wait (%p247_p5), %s167_s22, 128  }
  0x6a   : > { %364 = vsyncadd (%p247_p5), %s167_s22, 4294967168  ;;  %p14_p8 = scmp.ge.s32.totalorder %s418_s12, 4   ;;  %s555_s6 = smov %s371_s7 }
  0x6b   : > { %s556_s7 = smov %s375_s8  ;;  %s557_s8 = smov %s430_s15 }
  0x6c   : > { %s558_s9 = smov %s418_s12  ;;  %16 = sbr.rel (!%p14_p8) target bundleno = 5 (0x5), region = 69 }
  0x71   :  { %172 = vsyncpa [#allocation3], 1 }
  0x72   :  { %174 = vsyncpa [#allocation3 + $0x1], 1 }
  0x73   :  { %175 = vsyncpa [#allocation4], 1 }
  0x74   :  { %177 = vsyncpa [#allocation4 + $0x1], 1 }

</bundles_post_ra>
